<compile_context>
chip_gen: v7x
topology: tpu7x:2x2x1
jax: 0.10.0
libtpu: 0.0.40
codegen_flags: <defaults>
</compile_context>

<pallas_src>
import functools

import jax
import jax.numpy as jnp
from jax.experimental import pallas as pl
from jax.experimental.pallas import tpu as pltpu


def _cdiv(a, b):
    return (a + b - 1) // b


def _layernorm_kernel(x_ref, g_ref, o_ref, *, eps):
    # x_ref: (T_B, C, T_HW)  g_ref: (1, C, 1)  o_ref: (T_B, C, T_HW)
    x = x_ref[...].astype(jnp.float32)                    # single upcast of x
    mean = jnp.mean(x, axis=1, keepdims=True)             # (T_B, 1, T_HW) sublane reduce
    mean_sq = jnp.mean(x * x, axis=1, keepdims=True)      # E[x^2] in the same pass
    var = jnp.maximum(mean_sq - mean * mean, 0.0)         # biased variance (unbiased=False)
    inv = jax.lax.rsqrt(var + eps)                        # EUP slot (free-ish)
    out = (x - mean) * inv * g_ref[...].astype(jnp.float32)
    o_ref[...] = out.astype(o_ref.dtype)


def _choose_tiles(B, C, HW):
    """Pick (T_B, T_HW) for a lane-dense (T_B, C, T_HW) block.

    Budget is accounted in f32 bytes (in-kernel temporaries are f32 regardless of the
    input dtype). Per step: in(2 bufs) + out(2 bufs) + ~3 f32 temps ~= 7-8 x tile,
    so a ~4 MiB tile keeps the total around 28-32 MiB -- under the 48 MiB limit and
    under v7x's 64 MiB physical VMEM.
    """
    tile_budget_f32 = 4 * 1024 * 1024
    max_elems = tile_budget_f32 // 4
    max_hw = max(1, max_elems // max(C, 1))

    if max_hw >= HW:
        # Whole spatial extent per step; block multiple batch rows per step so each
        # step still moves a large contiguous DMA (amortizes per-step overhead).
        t_hw = HW
        t_b = max(1, min(B, max_hw // HW))
        # Keep some grid steps for megacore unless steps would drop below ~1 MiB.
        min_step_bytes = 1 << 20
        while t_b > 1 and _cdiv(B, t_b) < 8 and (t_b // 2) * C * HW * 4 >= min_step_bytes:
            t_b //= 2
        return t_b, t_hw

    # Spatial tiling (one batch row per step): lane-dense 128-multiples. Prefer a width
    # that divides HW exactly (full unmasked stores); otherwise rely on the ragged last
    # block (masked tail store) -- no wrapper-side pad/slice either way.
    t_b = 1
    if HW <= 128:
        return t_b, HW
    t_hw = max(128, (min(max_hw, HW) // 128) * 128)
    k_hi = t_hw // 128
    k_lo = max(1, (k_hi + 1) // 2)
    for k in range(k_hi, k_lo - 1, -1):
        if HW % (128 * k) == 0:
            t_hw = 128 * k
            break
    return t_b, t_hw


def layernorm_nchw(x, g):
    """x: (B, C, H, W), g: (1, C, 1, 1) -> (B, C, H, W).

    Matches torch: eps = 1e-5 for float32, 1e-3 otherwise;
    var over dim=1 with unbiased=False.
    """
    B, C, H, W = x.shape
    HW = H * W
    eps = 1e-05 if x.dtype == jnp.float32 else 1e-03

    t_b, t_hw = _choose_tiles(B, C, HW)
    n_b = _cdiv(B, t_b)
    n_hw = _cdiv(HW, t_hw)

    x3 = x.reshape(B, C, HW)
    g3 = g.reshape(1, C, 1)

    kernel = functools.partial(_layernorm_kernel, eps=eps)

    out = pl.pallas_call(
        kernel,
        out_shape=jax.ShapeDtypeStruct((B, C, HW), x.dtype),
        grid_spec=pltpu.PrefetchScalarGridSpec(
            num_scalar_prefetch=0,
            grid=(n_b, n_hw),
            in_specs=[
                pl.BlockSpec((t_b, C, t_hw), lambda i, j: (i, 0, j)),
                pl.BlockSpec((1, C, 1), lambda i, j: (0, 0, 0)),
            ],
            out_specs=pl.BlockSpec((t_b, C, t_hw), lambda i, j: (i, 0, j)),
        ),
        compiler_params=pltpu.CompilerParams(
            dimension_semantics=("parallel", "parallel"),
            vmem_limit_bytes=48 * 1024 * 1024,
        ),
        cost_estimate=pl.CostEstimate(
            flops=6 * B * C * HW,
            transcendentals=B * HW,
            bytes_accessed=2 * B * C * HW * x.dtype.itemsize,
        ),
    )(x3, g3)

    return out.reshape(B, C, H, W)


if __name__ == "__main__":
    key = jax.random.PRNGKey(0)
    B, C, H, W = 2, 4, 16, 16

    x = jax.random.normal(key, (B, C, H, W), dtype=jnp.float32)
    # nn.Parameter(torch.ones(1, dim, 1, 1)) -> deterministic ones
    g = jnp.ones((1, C, 1, 1), dtype=jnp.float32)

    out = layernorm_nchw(x, g)
    out = jax.block_until_ready(out)

    # reference in plain JAX for sanity
    eps = 1e-05
    mean = jnp.mean(x, axis=1, keepdims=True)
    var = jnp.mean((x - mean) ** 2, axis=1, keepdims=True)
    ref = (x - mean) * jax.lax.rsqrt(var + eps) * g
    assert jnp.allclose(out, ref, atol=1e-5, rtol=1e-5), "mismatch vs reference"

    print("KERNEL_OK")
</pallas_src>

<mosaic_0001>
module attributes {stable_mosaic.version = 11 : i64} {
  func.func @_layernorm_kernel(%arg0: i32, %arg1: i32, %arg2: memref<2x4x256xf32, #tpu.memory_space<vmem>>, %arg3: memref<1x4x1xf32, #tpu.memory_space<vmem>>, %arg4: memref<2x4x256xf32, #tpu.memory_space<vmem>>) attributes {dimension_semantics = [#tpu.dimension_semantics<parallel>, #tpu.dimension_semantics<parallel>], iteration_bounds = array<i64: 1, 1>, scalar_prefetch = 0 : i64, scratch_operands = 0 : i64, tpu.core_type = #tpu.core_type<tc>, window_params = [{transform_indices = @transform_0, window_bounds = array<i64: 2, 4, 256>}, {pipeline_mode = #tpu.pipeline_mode<synchronous>, transform_indices = @transform_1, window_bounds = array<i64: 1, 4, 1>}, {transform_indices = @transform_2, window_bounds = array<i64: 2, 4, 256>}]} {
    %c0 = arith.constant 0 : index
    %c0_0 = arith.constant 0 : index
    %c0_1 = arith.constant 0 : index
    %0 = vector.load %arg2[%c0, %c0_0, %c0_1] : memref<2x4x256xf32, #tpu.memory_space<vmem>>, vector<2x4x256xf32>
    %cst = arith.constant dense<0.000000e+00> : vector<2x256xf32>
    %1 = vector.multi_reduction <add>, %0, %cst [1] : vector<2x4x256xf32> to vector<2x256xf32>
    %2 = vector.shape_cast %1 : vector<2x256xf32> to vector<2x1x256xf32>
    %cst_2 = arith.constant 4.000000e+00 : f32
    %3 = vector.broadcast %cst_2 : f32 to vector<2x1x256xf32>
    %4 = arith.divf %2, %3 : vector<2x1x256xf32>
    %5 = arith.mulf %0, %0 : vector<2x4x256xf32>
    %cst_3 = arith.constant dense<0.000000e+00> : vector<2x256xf32>
    %6 = vector.multi_reduction <add>, %5, %cst_3 [1] : vector<2x4x256xf32> to vector<2x256xf32>
    %7 = vector.shape_cast %6 : vector<2x256xf32> to vector<2x1x256xf32>
    %cst_4 = arith.constant 4.000000e+00 : f32
    %8 = vector.broadcast %cst_4 : f32 to vector<2x1x256xf32>
    %9 = arith.divf %7, %8 : vector<2x1x256xf32>
    %10 = arith.mulf %4, %4 : vector<2x1x256xf32>
    %11 = arith.subf %9, %10 : vector<2x1x256xf32>
    %cst_5 = arith.constant 0.000000e+00 : f32
    %12 = vector.broadcast %cst_5 : f32 to vector<2x1x256xf32>
    %13 = arith.maximumf %11, %12 : vector<2x1x256xf32>
    %cst_6 = arith.constant 9.99999974E-6 : f32
    %14 = vector.broadcast %cst_6 : f32 to vector<2x1x256xf32>
    %15 = arith.addf %13, %14 : vector<2x1x256xf32>
    %16 = math.rsqrt %15 : vector<2x1x256xf32>
    %17 = vector.broadcast %4 : vector<2x1x256xf32> to vector<2x4x256xf32>
    %18 = arith.subf %0, %17 : vector<2x4x256xf32>
    %19 = vector.broadcast %16 : vector<2x1x256xf32> to vector<2x4x256xf32>
    %20 = arith.mulf %18, %19 : vector<2x4x256xf32>
    %c0_7 = arith.constant 0 : index
    %c0_8 = arith.constant 0 : index
    %c0_9 = arith.constant 0 : index
    %21 = vector.load %arg3[%c0_7, %c0_8, %c0_9] : memref<1x4x1xf32, #tpu.memory_space<vmem>>, vector<1x4x1xf32>
    %22 = vector.broadcast %21 : vector<1x4x1xf32> to vector<2x4x256xf32>
    %23 = arith.mulf %20, %22 : vector<2x4x256xf32>
    %c0_10 = arith.constant 0 : index
    %c0_11 = arith.constant 0 : index
    %c0_12 = arith.constant 0 : index
    %24 = vector.load %arg4[%c0_10, %c0_11, %c0_12] : memref<2x4x256xf32, #tpu.memory_space<vmem>>, vector<2x4x256xf32>
    tpu.vector_store %arg4[%c0_10, %c0_11, %c0_12], %23 {strides = array<i32>} : memref<2x4x256xf32, #tpu.memory_space<vmem>>, vector<2x4x256xf32>,
    return
  }
  func.func @transform_0(%arg0: i32, %arg1: i32) -> (i32, i32, i32) {
    %c0_i32 = arith.constant 0 : i32
    %c0_i32_0 = arith.constant 0 : i32
    return %arg0, %c0_i32, %arg1 : i32, i32, i32
  }
  func.func @transform_1(%arg0: i32, %arg1: i32) -> (i32, i32, i32) {
    %c0_i32 = arith.constant 0 : i32
    %c0_i32_0 = arith.constant 0 : i32
    %c0_i32_1 = arith.constant 0 : i32
    %c0_i32_2 = arith.constant 0 : i32
    return %c0_i32, %c0_i32_0, %c0_i32_1 : i32, i32, i32
  }
  func.func @transform_2(%arg0: i32, %arg1: i32) -> (i32, i32, i32) {
    %c0_i32 = arith.constant 0 : i32
    %c0_i32_0 = arith.constant 0 : i32
    return %arg0, %c0_i32, %arg1 : i32, i32, i32
  }
}

</mosaic_0001>

<bundles_post_ra>
// kernel: tpu_custom_call.1
= control target key start
LH: loop header
LB: loop body
LE: loop exit
PB: predicated region body
PF: predicated region fallthrough
CT: control target
= control target key end

     0   :  { %7 = vsyncpa [#allocation3], 0  ;;  %s325_s0 = inlined_call_operand.hbm [shape: f32[2,4,256], index: 0, kind: input, shape index: {}]   ;;  %s326_s1 = inlined_call_operand.vmem [shape: f32[1,4,1], index: 1, kind: input, shape index: {}]   ;;  %s327_s2 = inlined_call_operand.hbm [shape: f32[2,4,256], index: 2, kind: output, shape index: {}]  }
   0x1   :  { %8 = vsyncpa [#allocation4], 0  ;;  %s247_s9 = smov [#allocation2]   ;;  %s199_s13 = scalar_lea.hbm %s325_s0, 256 }
   0x2   :  { %s14_s10 = sshll.u32 %s247_s9, 4  ;;  %p200_p0 = scmp.ne.s32.totalorder %s325_s0, %s199_s13  ;;  %s15_s10 = int_to_ptr.vmem [resolvable:$true] %s14_s10 }
   0x3   :  { %p203_p1 = scmp.lt.u32.totalorder %s199_s13, %s325_s0 }
   0x5   :  { %p205_p2 = pnand %p203_p1, %p200_p0 }
   0x7   :  { %208 = shalt.err (!%p205_p2)
}
   0x8   :  { %s209_s18 = scalar_lea.vmem %s15_s10, 256  ;;  %p214_p4 = scmp.lt.s32.totalorder %s15_s10, %s15_s10 }
   0x9   :  { %p210_p3 = scmp.ne.s32.totalorder %s15_s10, %s209_s18  ;;  %p215_p5 = scmp.lt.s32.totalorder %s209_s18, %s209_s18 }
   0xb   :  { %p216_p6 = por %p215_p5, %p214_p4 }
   0xd   :  { %p217_p7 = pnand %p216_p6, %p210_p3 }
   0xf   :  { %220 = shalt.err (!%p217_p7)
}
  0x10   :  { %s248_s19 = smov 128   ;;  %s249_s20 = smov 8  }
  0x11   :  { %20 = dma.hbm_to_vmem [thread:$0]  %s325_s0, 256, %s15_s10, [#allocation3], %s248_s19, %s248_s19, %s249_s20  }
  0x12   :  { %243 = dma.done.wait [#allocation3], 256  }
  0x13   :  { %244 = vsyncadd [#allocation3], 4294967040  ;;  %v250_v0 = vmov 0   ;;  %v148_v1 = vld [vmem:[%s326_s1] sm:$0xf]  ;;  %v288_v3 = vld [vmem:[#allocation2 + $0x8] sm:$0xff] }
  0x14   :  { %188 = vset.pattern.permute.xlu0 %v250_v0  ;;  %v286_v2 = vld [vmem:[#allocation2] sm:$0xff]  ;;  %vm34_vm0 = vcmask 1043456   ;;  %v31_v6 = vcombine.high %v288_v3, %v288_v3  ;;  %v69_v7 = vmul.f32 %v288_v3, %v288_v3  ;;  %s252_s0 = smov [#allocation5]  }
  0x15   :  { %151 = vperm.xlu0 %188, %v148_v1   ;;  %v30_v4 = vcombine.high %v286_v2, %v286_v2  ;;  %v68_v5 = vmul.f32 %v286_v2, %v286_v2  ;;  %v35_v8 = vsel %vm34_vm0, %v286_v2, 0.0  ;;  %v49_v9 = vsel %vm34_vm0, %v288_v3, 0.0  ;;  %s170_s1 = sshll.u32 %s252_s0, 4  ;;  %s171_s1 = int_to_ptr.vmem [resolvable:$true] %s170_s1 }
  0x16   :  { %v36_v12 = vrot.slane %v35_v8, 4  ;;  %v56_v13 = vsel %vm34_vm0, %v31_v6, 0.0  ;;  %v73_v14 = vcombine.high %v69_v7, %v69_v7  ;;  %v50_v15 = vrot.slane %v49_v9, 4  ;;  %s221_s25 = scalar_lea.vmem %s171_s1, 256  ;;  %p226_p9 = scmp.lt.s32.totalorder %s171_s1, %s171_s1 }
  0x17   :  { %v42_v10 = vsel %vm34_vm0, %v30_v4, 0.0  ;;  %v72_v11 = vcombine.high %v68_v5, %v68_v5  ;;  %v76_v16 = vsel %vm34_vm0, %v68_v5, 0.0  ;;  %v90_v18 = vsel %vm34_vm0, %v69_v7, 0.0  ;;  %p222_p8 = scmp.ne.s32.totalorder %s171_s1, %s221_s25  ;;  %p227_p10 = scmp.lt.s32.totalorder %s221_s25, %s221_s25 }
  0x18   :  { %v43_v17 = vrot.slane %v42_v10, 4  ;;  %v57_v19 = vrot.slane %v56_v13, 4  ;;  %v37_v21 = vadd.f32 %v36_v12, %v35_v8  ;;  %v77_v22 = vrot.slane %v76_v16, 4 }
  0x19   :  { %v83_v20 = vsel %vm34_vm0, %v72_v11, 0.0  ;;  %v97_v23 = vsel %vm34_vm0, %v73_v14, 0.0  ;;  %v51_v24 = vadd.f32 %v50_v15, %v49_v9  ;;  %v91_v25 = vrot.slane %v90_v18, 4  ;;  %p228_p11 = por %p227_p10, %p226_p9 }
  0x1a   :  { %v44_v26 = vadd.f32 %v43_v17, %v42_v10  ;;  %v84_v27 = vrot.slane %v83_v20, 4  ;;  %v58_v28 = vadd.f32 %v57_v19, %v56_v13  ;;  %v98_v29 = vrot.slane %v97_v23, 4 }
  0x1b   :  { %v38_v30 = vrot.slane %v37_v21, 2  ;;  %v78_v31 = vadd.f32 %v77_v22, %v76_v16  ;;  %v52_v32 = vrot.slane %v51_v24, 2  ;;  %v92_v33 = vadd.f32 %v91_v25, %v90_v18  ;;  %p229_p12 = pnand %p228_p11, %p222_p8 }
  0x1c   :  { %v45_v34 = vrot.slane %v44_v26, 2  ;;  %v85_v35 = vadd.f32 %v84_v27, %v83_v20  ;;  %v59_v36 = vrot.slane %v58_v28, 2  ;;  %v99_v37 = vadd.f32 %v98_v29, %v97_v23 }
  0x1d   :  { %v39_v38 = vadd.f32 %v38_v30, %v37_v21  ;;  %v79_v39 = vrot.slane %v78_v31, 2  ;;  %v53_v40 = vadd.f32 %v52_v32, %v51_v24  ;;  %v93_v41 = vrot.slane %v92_v33, 2 }
  0x1e   :  { %v46_v42 = vadd.f32 %v45_v34, %v44_v26  ;;  %v86_v43 = vrot.slane %v85_v35, 2  ;;  %v60_v44 = vadd.f32 %v59_v36, %v58_v28  ;;  %v100_v45 = vrot.slane %v99_v37, 2 }
  0x1f   :  { %v40_v46 = vrot.slane %v39_v38, 1  ;;  %v80_v47 = vadd.f32 %v79_v39, %v78_v31  ;;  %v54_v48 = vrot.slane %v53_v40, 1  ;;  %v94_v49 = vadd.f32 %v93_v41, %v92_v33 }
  0x20   :  { %v47_v50 = vrot.slane %v46_v42, 1  ;;  %v87_v51 = vadd.f32 %v86_v43, %v85_v35  ;;  %v61_v52 = vrot.slane %v60_v44, 1  ;;  %v101_v53 = vadd.f32 %v100_v45, %v99_v37 }
  0x21   :  { %v41_v54 = vadd.f32 %v40_v46, %v39_v38  ;;  %v81_v55 = vrot.slane %v80_v47, 1  ;;  %v55_v56 = vadd.f32 %v54_v48, %v53_v40  ;;  %v95_v57 = vrot.slane %v94_v49, 1 }
  0x22   :  { %v48_v58 = vadd.f32 %v47_v50, %v46_v42  ;;  %v88_v59 = vrot.slane %v87_v51, 1  ;;  %v62_v60 = vadd.f32 %v61_v52, %v60_v44  ;;  %v102_v61 = vrot.slane %v101_v53, 1 }
  0x23   :  { %v64_v62 = vmul.f32 0.25, %v41_v54  ;;  %v82_v63 = vadd.f32 %v81_v55, %v80_v47  ;;  %v66_v0 = vmul.f32 0.25, %v55_v56  ;;  %v96_v1 = vadd.f32 %v95_v57, %v94_v49 }
  0x24   :  { %v65_v4 = vmul.f32 0.25, %v48_v58  ;;  %v89_v5 = vadd.f32 %v88_v59, %v87_v51  ;;  %v67_v6 = vmul.f32 0.25, %v62_v60  ;;  %v103_v7 = vadd.f32 %v102_v61, %v101_v53 }
  0x25   :  { %v104_v8 = vmul.f32 0.25, %v82_v63  ;;  %v108_v9 = vmul.f32 %v64_v62, %v64_v62  ;;  %v106_v10 = vmul.f32 0.25, %v96_v1  ;;  %v110_v11 = vmul.f32 %v66_v0, %v66_v0 }
  0x26   :  { %v105_v12 = vmul.f32 0.25, %v89_v5  ;;  %v109_v13 = vmul.f32 %v65_v4, %v65_v4  ;;  %v107_v14 = vmul.f32 0.25, %v103_v7  ;;  %v111_v15 = vmul.f32 %v67_v6, %v67_v6 }
  0x27   :  { %v112_v16 = vsub.f32 %v104_v8, %v108_v9  ;;  %v114_v17 = vsub.f32 %v106_v10, %v110_v11  ;;  %v251_v29 = vmov 839922192   ;;  %v156_v31 = vlaneseq }
  0x28   :  { %v113_v18 = vsub.f32 %v105_v12, %v109_v13  ;;  %v115_v19 = vsub.f32 %v107_v14, %v111_v15  ;;  %v154_v30 = vunpack.c.l.s4 %v251_v29  ;;  %v132_v34 = vcombine.low %v64_v62, %v65_v4 }
  0x29   :  { %v116_v20 = vmax.f32 %v112_v16, 0.0  ;;  %v118_v21 = vmax.f32 %v114_v17, 0.0  ;;  %v133_v35 = vcombine.low %v66_v0, %v67_v6  ;;  %v157_v38 = vshrl.u32 %v156_v31, 7 }
  0x2a   :  { %v117_v22 = vmax.f32 %v113_v18, 0.0  ;;  %v119_v23 = vmax.f32 %v115_v19, 0.0  ;;  %v155_v37 = vunpack.c.0.s8 %v154_v30  ;;  %v136_v39 = vsub.f32 %v286_v2, %v132_v34 }
  0x2b   :  { %v120_v24 = vadd.f32 1e-05, %v116_v20  ;;  %v122_v25 = vadd.f32 1e-05, %v118_v21  ;;  %v137_v40 = vsub.f32 %v288_v3, %v133_v35 }
  0x2c   :  { %v121_v26 = vadd.f32 1e-05, %v117_v22  ;;  %v123_v27 = vadd.f32 1e-05, %v119_v23  ;;  %v158_v43 = vsub.s32 %v155_v37, %v157_v38 }
  0x2d   :  { %191 = vrsqrt.f32 %v120_v24 }
  0x2e   :  { %193 = vrsqrt.f32 %v122_v25 }
  0x2f   :  { %195 = vrsqrt.f32 %v121_v26 }
  0x30   :  { %197 = vrsqrt.f32 %v123_v27 }
  0x37   :  { %v192_v28 = vpop.eup %191 }
  0x38   :  { %v194_v32 = vpop.eup %193 }
  0x39   :  { %v196_v33 = vpop.eup %195 }
  0x3a   :  { %v198_v36 = vpop.eup %197  ;;  %v142_v41 = vcombine.low %v192_v28, %v196_v33 }
  0x3b   :  { %v143_v42 = vcombine.low %v194_v32, %v198_v36 }
  0x3c   :  { %v146_v44 = vmul.f32 %v142_v41, %v136_v39 }
  0x3d   :  { %v147_v45 = vmul.f32 %v143_v42, %v137_v40 }
  0x94   :  { %v152_v46 = vpop.permute.xlu0 %151 }
  0x95   :  { %v159_v47 = vrot.slane %v152_v46, %v158_v43 }
  0x97   :  { %v161_v48 = vmul.f32 %v159_v47, %v146_v44  ;;  %v162_v49 = vmul.f32 %v159_v47, %v147_v45 }
  0x99   :  { %163 = vst [vmem:[#allocation5] sm:$0xff] %v161_v48  ;;  %164 = vst [vmem:[#allocation5 + $0x8] sm:$0xff] %v162_v49 }
  0x9a   :  { %232 = shalt.err (!%p229_p12)
}
  0x9b   :  { %s233_s28 = scalar_lea.hbm %s327_s2, 256 }
  0x9c   :  { %p234_p13 = scmp.ne.s32.totalorder %s327_s2, %s233_s28  ;;  %p237_p0 = scmp.lt.u32.totalorder %s233_s28, %s327_s2 }
  0x9e   :  { %p239_p1 = pnand %p237_p0, %p234_p13 }
  0xa0   :  { %242 = shalt.err (!%p239_p1)
}
  0xa1   :  { %176 = dma.vmem_to_hbm [thread:$0]  %s171_s1, 256, %s327_s2, [#allocation4], %s248_s19, %s248_s19, %s249_s20  }
  0xa2   :  { %245 = dma.done.wait [#allocation4], 256  }
  0xa3   :  { %246 = vsyncadd [#allocation4], 4294967040 }
  0xa4   :  { %180 = vsyncpa [#allocation3], 1 }
  0xa5   :  { %181 = vsyncpa [#allocation4], 1 }

</bundles_post_ra>
